<compile_context>
chip_gen: v5e
topology: v5e:2x2
jax: 0.10.0
libtpu: 0.0.40
codegen_flags: <defaults>
</compile_context>

<pallas_src>
import math

import jax
import jax.numpy as jnp
from jax.experimental import pallas as pl
from jax.experimental.pallas import tpu as pltpu

_MIB = 1024 * 1024


# ----------------------------------------------------------------------------- kernels

def mlp_fused_kernel(x_ref, w1_ref, w2_ref, beff_ref, o_ref):
    # x_ref:    (tn, H)      bf16/f32   row tile of the flattened input
    # w1_ref:   (H, H)       bf16/f32   full W1^T  (constant index map -> VMEM resident)
    # w2_ref:   (H, L_pad)   bf16/f32   full W2^T  (constant index map -> VMEM resident)
    # beff_ref: (1, L_pad)   f32        folded bias  b1 @ W2^T + b2
    # o_ref:    (tn, L_pad)  output dtype
    h = jnp.dot(x_ref[...], w1_ref[...], preferred_element_type=jnp.float32)
    out = jnp.dot(h.astype(w2_ref.dtype), w2_ref[...],
                  preferred_element_type=jnp.float32)
    o_ref[...] = (out + beff_ref[...]).astype(o_ref.dtype)


def mlp_ktiled_kernel(x_ref, w1_ref, w2_ref, beff_ref, o_ref, acc_ref):
    # K-tiled over the intermediate hidden dim (only used for very large H):
    # x_ref:    (tn, H)       w1_ref: (H, tk)      w2_ref: (tk, L_pad)
    # beff_ref: (1, L_pad)    o_ref:  (tn, L_pad)  acc_ref: (tn, L_pad) f32 accumulator
    k = pl.program_id(1)

    @pl.when(k == 0)
    def _init():
        acc_ref[...] = jnp.broadcast_to(beff_ref[...], acc_ref.shape)

    h = jnp.dot(x_ref[...], w1_ref[...], preferred_element_type=jnp.float32)
    acc_ref[...] += jnp.dot(h.astype(w2_ref.dtype), w2_ref[...],
                            preferred_element_type=jnp.float32)

    @pl.when(k == pl.num_programs(1) - 1)
    def _finalize():
        o_ref[...] = acc_ref[...].astype(o_ref.dtype)


# ----------------------------------------------------------------------------- helpers

def _round_up(x, m):
    return ((x + m - 1) // m) * m


def _choose_tiles(n_rows, hidden, *, tile_n, tile_k):
    """Pick (tn, tk). tk == hidden means 'fused' (no K tiling, weights resident)."""
    if tile_n is None:
        tile_n = 512
    if n_rows <= tile_n:
        # Split rows into >= 2 tiles when possible so the "parallel" row axis can
        # shard across v7x's two TensorCores (harmless on single-TC v5e/v6e).
        # 16-row alignment keeps bf16 sublane packing clean.
        tn = _round_up(pl.cdiv(n_rows, 2), 16) if n_rows > 16 else n_rows
    else:
        tn = tile_n

    if tile_k is not None:
        tk = tile_k
    elif hidden <= 2048:
        tk = hidden          # fused path: full-H contraction, W1/W2 VMEM-resident
    else:
        tk = next((c for c in (1024, 512, 256, 128) if hidden % c == 0), hidden)
    return tn, tk


def _vmem_limit_bytes(tn, tk, hidden, l_pad, in_item, out_item, fused):
    # Conservative estimate: assume double-buffering on every pipelined operand.
    est = (2 * tn * hidden * in_item            # x block
           + 2 * hidden * tk * in_item          # W1^T block
           + 2 * tk * l_pad * in_item           # W2^T block
           + 2 * l_pad * 4                      # folded bias
           + 2 * tn * l_pad * out_item          # output block
           + (0 if fused else tn * l_pad * 4))  # f32 accumulator scratch
    if est <= 12 * _MIB:
        return None  # comfortably inside every chip's default scoped VMEM
    # v5e's default scoped VMEM is 16 MiB; raise explicitly. Cap leaves headroom
    # on v7x's 64 MiB physical VMEM.
    return int(min(max(est * 3 // 2, 32 * _MIB), 48 * _MIB))


# ----------------------------------------------------------------------------- wrapper

def prepare_mlp_params(w1, b1, w2, b2, *, dropout_rate=0.0, use_bf16=True):
    """One-time preprocessing of PyTorch-convention Linear params.

    w1: [H, H], b1: [H], w2: [L, H], b2: [L]  (PyTorch stores W as [out, in]).
    Transposes, pads num_labels up to a lane-dense multiple of 128, folds b1 into
    an effective output bias, and casts the matmul operands to bf16. Call this at
    init time and reuse the result for every forward call.
    """
    del dropout_rate  # eval-mode dropout == identity
    hidden = w1.shape[1]
    num_labels = w2.shape[0]
    compute_dtype = jnp.bfloat16 if use_bf16 else jnp.float32

    w1_t = jnp.asarray(w1, jnp.float32).T                 # [H, H]  (in, out)
    w2_t = jnp.asarray(w2, jnp.float32).T                 # [H, L]  (in, out)

    l_pad = _round_up(max(num_labels, 128), 128)
    if l_pad != num_labels:
        w2_t = jnp.pad(w2_t, ((0, 0), (0, l_pad - num_labels)))
        b2 = jnp.pad(jnp.asarray(b2, jnp.float32), (0, l_pad - num_labels))
    else:
        b2 = jnp.asarray(b2, jnp.float32)

    # out = x @ W1^T @ W2^T + (b1 @ W2^T + b2); fold b1 in f32 once, here.
    b_eff = (jnp.asarray(b1, jnp.float32) @ w2_t + b2).reshape(1, l_pad)

    return {
        "w1": w1_t.astype(compute_dtype),      # [H, H]
        "w2": w2_t.astype(compute_dtype),      # [H, L_pad]
        "b_eff": b_eff,                        # [1, L_pad] f32
        "hidden": hidden,
        "num_labels": num_labels,
        "l_pad": l_pad,
        "compute_dtype": compute_dtype,
    }


def mlp_forward(x, params, *, tile_n=None, tile_k=None):
    """x: [..., H]  ->  [..., num_labels] in x.dtype (matmuls in bf16, f32 accumulation)."""
    *lead, hidden = x.shape
    assert hidden == params["hidden"], "hidden_size mismatch"
    n_rows = math.prod(lead) if lead else 1

    l_pad = params["l_pad"]
    num_labels = params["num_labels"]
    out_dtype = x.dtype

    x2 = x.reshape(n_rows, hidden).astype(params["compute_dtype"])
    w1_c, w2_c, b_eff = params["w1"], params["w2"], params["b_eff"]

    tn, tk = _choose_tiles(n_rows, hidden, tile_n=tile_n, tile_k=tile_k)
    fused = tk == hidden
    if not fused:
        assert hidden % tk == 0, "tile_k must divide hidden_size"

    in_item = jnp.dtype(params["compute_dtype"]).itemsize
    out_item = jnp.dtype(out_dtype).itemsize
    n_row_tiles = pl.cdiv(n_rows, tn)
    w_reads = 1 if fused else n_row_tiles   # fused: constant index map -> read once

    flops = 2 * n_rows * hidden * (hidden + l_pad)
    bytes_accessed = int(
        n_rows * hidden * in_item
        + hidden * hidden * in_item * w_reads
        + hidden * l_pad * in_item * w_reads
        + l_pad * 4
        + n_rows * l_pad * out_item
    )
    vmem_limit = _vmem_limit_bytes(tn, tk, hidden, l_pad, in_item, out_item, fused)

    if fused:
        out_padded = pl.pallas_call(
            mlp_fused_kernel,
            out_shape=jax.ShapeDtypeStruct((n_rows, l_pad), out_dtype),
            grid=(n_row_tiles,),
            in_specs=[
                pl.BlockSpec((tn, hidden), lambda i: (i, 0)),       # x row tile
                pl.BlockSpec((hidden, hidden), lambda i: (0, 0)),   # W1^T (resident)
                pl.BlockSpec((hidden, l_pad), lambda i: (0, 0)),    # W2^T (resident)
                pl.BlockSpec((1, l_pad), lambda i: (0, 0)),         # folded bias
            ],
            out_specs=pl.BlockSpec((tn, l_pad), lambda i: (i, 0)),
            compiler_params=pltpu.CompilerParams(
                dimension_semantics=("parallel",),
                vmem_limit_bytes=vmem_limit,
            ),
            cost_estimate=pl.CostEstimate(
                flops=flops, transcendentals=0, bytes_accessed=bytes_accessed
            ),
        )(x2, w1_c, w2_c, b_eff)
    else:
        out_padded = pl.pallas_call(
            mlp_ktiled_kernel,
            out_shape=jax.ShapeDtypeStruct((n_rows, l_pad), out_dtype),
            grid=(n_row_tiles, hidden // tk),
            in_specs=[
                pl.BlockSpec((tn, hidden), lambda i, k: (i, 0)),    # x (const over k)
                pl.BlockSpec((hidden, tk), lambda i, k: (0, k)),    # W1^T column block
                pl.BlockSpec((tk, l_pad), lambda i, k: (k, 0)),     # W2^T row block
                pl.BlockSpec((1, l_pad), lambda i, k: (0, 0)),      # folded bias
            ],
            out_specs=pl.BlockSpec((tn, l_pad), lambda i, k: (i, 0)),
            scratch_shapes=[pltpu.VMEM((tn, l_pad), jnp.float32)],
            compiler_params=pltpu.CompilerParams(
                dimension_semantics=("parallel", "arbitrary"),
                vmem_limit_bytes=vmem_limit,
            ),
            cost_estimate=pl.CostEstimate(
                flops=flops, transcendentals=0, bytes_accessed=bytes_accessed
            ),
        )(x2, w1_c, w2_c, b_eff)

    out = out_padded[:, :num_labels] if l_pad != num_labels else out_padded
    return out.reshape(*lead, num_labels)


# ----------------------------------------------------------------------------- demo

if __name__ == "__main__":
    batch, seq, hidden, num_labels = 2, 16, 32, 8

    key = jax.random.PRNGKey(0)
    kx, kw1, kb1, kw2, kb2, kx2, kw1b, kb1b, kw2b, kb2b = jax.random.split(key, 10)

    # PyTorch Linear convention: W [out, in], b [out].
    x = jax.random.normal(kx, (batch, seq, hidden), dtype=jnp.float32)
    w1 = jax.random.normal(kw1, (hidden, hidden), dtype=jnp.float32) * 0.05
    b1 = jax.random.normal(kb1, (hidden,), dtype=jnp.float32) * 0.05
    w2 = jax.random.normal(kw2, (num_labels, hidden), dtype=jnp.float32) * 0.05
    b2 = jax.random.normal(kb2, (num_labels,), dtype=jnp.float32) * 0.05

    params = prepare_mlp_params(w1, b1, w2, b2, dropout_rate=0.1)  # preprocess once
    out = jax.block_until_ready(mlp_forward(x, params))            # fused path

    ref = (x @ w1.T + b1) @ w2.T + b2                               # eval-mode dropout = id
    assert out.shape == (batch, seq, num_labels)
    assert jnp.allclose(out, ref, atol=2e-2, rtol=2e-2), "fused path mismatch vs reference"

    # Exercise the K-tiled accumulator path (used for very large hidden sizes).
    hidden2 = 256
    x2 = jax.random.normal(kx2, (batch * seq, hidden2), dtype=jnp.float32)
    w1b = jax.random.normal(kw1b, (hidden2, hidden2), dtype=jnp.float32) * 0.05
    b1b = jax.random.normal(kb1b, (hidden2,), dtype=jnp.float32) * 0.05
    w2b = jax.random.normal(kw2b, (num_labels, hidden2), dtype=jnp.float32) * 0.05
    b2b = jax.random.normal(kb2b, (num_labels,), dtype=jnp.float32) * 0.05

    params2 = prepare_mlp_params(w1b, b1b, w2b, b2b)
    out2 = jax.block_until_ready(mlp_forward(x2, params2, tile_k=128))
    ref2 = (x2 @ w1b.T + b1b) @ w2b.T + b2b
    assert out2.shape == (batch * seq, num_labels)
    assert jnp.allclose(out2, ref2, atol=2e-2, rtol=2e-2), "K-tiled path mismatch vs reference"

    print("KERNEL_OK")
</pallas_src>

<mosaic_0001>
module attributes {stable_mosaic.version = 11 : i64} {
  func.func @mlp_fused_kernel(%arg0: i32, %arg1: memref<16x32xbf16, #tpu.memory_space<vmem>>, %arg2: memref<32x32xbf16, #tpu.memory_space<vmem>>, %arg3: memref<32x128xbf16, #tpu.memory_space<vmem>>, %arg4: memref<1x128xf32, #tpu.memory_space<vmem>>, %arg5: memref<16x128xf32, #tpu.memory_space<vmem>>) attributes {dimension_semantics = [#tpu.dimension_semantics<parallel>], iteration_bounds = array<i64: 2>, scalar_prefetch = 0 : i64, scratch_operands = 0 : i64, tpu.core_type = #tpu.core_type<tc>, window_params = [{transform_indices = @transform_0, window_bounds = array<i64: 16, 32>}, {pipeline_mode = #tpu.pipeline_mode<synchronous>, transform_indices = @transform_1, window_bounds = array<i64: 32, 32>}, {pipeline_mode = #tpu.pipeline_mode<synchronous>, transform_indices = @transform_2, window_bounds = array<i64: 32, 128>}, {pipeline_mode = #tpu.pipeline_mode<synchronous>, transform_indices = @transform_3, window_bounds = array<i64: 1, 128>}, {transform_indices = @transform_4, window_bounds = array<i64: 16, 128>}]} {
    %c0 = arith.constant 0 : index
    %c0_0 = arith.constant 0 : index
    %0 = vector.load %arg1[%c0, %c0_0] : memref<16x32xbf16, #tpu.memory_space<vmem>>, vector<16x32xbf16>
    %c0_1 = arith.constant 0 : index
    %c0_2 = arith.constant 0 : index
    %1 = vector.load %arg2[%c0_1, %c0_2] : memref<32x32xbf16, #tpu.memory_space<vmem>>, vector<32x32xbf16>
    %cst = arith.constant dense<0.000000e+00> : vector<16x32xf32>
    %2 = tpu.matmul %0, %1, %cst {dimension_numbers = #tpu.dot_dimension_numbers<[1], [0], [0], [1], [0, 0, 1, 1], [], []>} : vector<16x32xbf16>, vector<32x32xbf16>, vector<16x32xf32> -> vector<16x32xf32>
    %3 = arith.truncf %2 : vector<16x32xf32> to vector<16x32xbf16>
    %c0_3 = arith.constant 0 : index
    %c0_4 = arith.constant 0 : index
    %4 = vector.load %arg3[%c0_3, %c0_4] : memref<32x128xbf16, #tpu.memory_space<vmem>>, vector<32x128xbf16>
    %cst_5 = arith.constant dense<0.000000e+00> : vector<16x128xf32>
    %5 = tpu.matmul %3, %4, %cst_5 {dimension_numbers = #tpu.dot_dimension_numbers<[1], [0], [0], [1], [0, 0, 1, 1], [], []>} : vector<16x32xbf16>, vector<32x128xbf16>, vector<16x128xf32> -> vector<16x128xf32>
    %c0_6 = arith.constant 0 : index
    %c0_7 = arith.constant 0 : index
    %6 = vector.load %arg4[%c0_6, %c0_7] : memref<1x128xf32, #tpu.memory_space<vmem>>, vector<1x128xf32>
    %7 = vector.broadcast %6 : vector<1x128xf32> to vector<16x128xf32>
    %8 = arith.addf %5, %7 : vector<16x128xf32>
    %c0_8 = arith.constant 0 : index
    %c0_9 = arith.constant 0 : index
    %9 = vector.load %arg5[%c0_8, %c0_9] : memref<16x128xf32, #tpu.memory_space<vmem>>, vector<16x128xf32>
    tpu.vector_store %arg5[%c0_8, %c0_9], %8 {strides = array<i32>} : memref<16x128xf32, #tpu.memory_space<vmem>>, vector<16x128xf32>,
    return
  }
  func.func @transform_0(%arg0: i32) -> (i32, i32) {
    %c0_i32 = arith.constant 0 : i32
    %c0_i32_0 = arith.constant 0 : i32
    return %arg0, %c0_i32 : i32, i32
  }
  func.func @transform_1(%arg0: i32) -> (i32, i32) {
    %c0_i32 = arith.constant 0 : i32
    %c0_i32_0 = arith.constant 0 : i32
    %c0_i32_1 = arith.constant 0 : i32
    return %c0_i32, %c0_i32_0 : i32, i32
  }
  func.func @transform_2(%arg0: i32) -> (i32, i32) {
    %c0_i32 = arith.constant 0 : i32
    %c0_i32_0 = arith.constant 0 : i32
    %c0_i32_1 = arith.constant 0 : i32
    return %c0_i32, %c0_i32_0 : i32, i32
  }
  func.func @transform_3(%arg0: i32) -> (i32, i32) {
    %c0_i32 = arith.constant 0 : i32
    %c0_i32_0 = arith.constant 0 : i32
    %c0_i32_1 = arith.constant 0 : i32
    return %c0_i32, %c0_i32_0 : i32, i32
  }
  func.func @transform_4(%arg0: i32) -> (i32, i32) {
    %c0_i32 = arith.constant 0 : i32
    %c0_i32_0 = arith.constant 0 : i32
    return %arg0, %c0_i32 : i32, i32
  }
}

</mosaic_0001>

<bundles_post_ra>
// kernel: tpu_custom_call.1
= control target key start
LH: loop header
LB: loop body
LE: loop exit
PB: predicated region body
PF: predicated region fallthrough
CT: control target
= control target key end

     0   :  { %9 = vsyncpa [#allocation3], 0  ;;  %s909_s0 = inlined_call_operand.hbm [shape: bf16[32,32], index: 0, kind: input, shape index: {}]   ;;  %s910_s1 = inlined_call_operand.hbm [shape: bf16[32,32], index: 1, kind: input, shape index: {}]   ;;  %s911_s2 = inlined_call_operand.hbm [shape: bf16[32,128], index: 2, kind: input, shape index: {}]   ;;  %s912_s3 = inlined_call_operand.vmem [shape: f32[1,128], index: 3, kind: input, shape index: {}]   ;;  %s913_s4 = inlined_call_operand.hbm [shape: f32[32,128], index: 4, kind: output, shape index: {}]  }
   0x1   :  { %11 = vsyncpa [#allocation3 + $0x1], 0 }
   0x2   :  { %12 = vsyncpa [#allocation6], 0 }
   0x3   :  { %13 = vsyncpa [#allocation4], 0 }
   0x4   :  { %15 = vsyncpa [#allocation4 + $0x1], 0  ;;  %s755_s15 = smov 0   ;;  %s757_s16 = smov 0  }
   0x5   :  { %s759_s17 = smov 0   ;;  %s761_s18 = smov 0  }
   0x6 LB: > { %s776_s19 = sadd.s32 4294967295, %s722_s18   ;;  %s443_s20 = sadd.s32 4294967294, %s722_s18   ;;  %s722_s18 = sphi %s761_s18, %s923_s18   ;;  %s718_s17 = sphi %s759_s17, %s922_s17   ;;  %s714_s16 = sphi %s757_s16, %s921_s16   ;;  %s710_s15 = sphi %s755_s15, %s920_s15  }
   0x7   : > { %p41_p0 = scmp.ne.s32.totalorder %s714_s16, %s710_s15  ;;  %p42_p1 = scmp.eq.s32.totalorder %s776_s19, 0 }
   0x8   : > { %p128_p2 = scmp.eq.s32.totalorder %s776_s19, 1  ;;  %p134_p3 = scmp.eq.s32.totalorder %s443_s20, 1 }
   0x9   : > { %p785_p4 = por %p42_p1, %p41_p0  ;;  %p444_p5 = scmp.ge.s32.totalorder %s722_s18, 1 }
   0xa   : > { %p790_p6 = por %p134_p3, %p41_p0  ;;  %p141_p7 = scmp.lt.s32.totalorder %s722_s18, 3 }
   0xb   : > { %s152_s25 = sshll.u32 %s910_s1, 4  ;;  %s724_s27 = smov [#allocation5]   ;;  %s153_s25 = int_to_ptr.hbm [resolvable:$true] %s152_s25 }
   0xc   : > { %p798_p8 = pnand %p444_p5, %p141_p7  ;;  %s154_s28 = sshll.u32 %s724_s27, 4  ;;  %s155_s28 = int_to_ptr.vmem [resolvable:$true] %s154_s28 }
   0xd   : > { %s166_s5 = sshll.u32 %s911_s2, 4  ;;  %s725_s6 = smov 64   ;;  %s167_s5 = int_to_ptr.hbm [resolvable:$true] %s166_s5 }
   0xe   : > { %p502_p9 = pneg %p798_p8  ;;  %s726_s7 = smov 4  }
   0xf   : > { %s727_s8 = smov [#allocation7]   ;;  %s817_s10 = sadd.s32 1, %s722_s18  }
  0x10   : > { %p503_p10 = pnand %p502_p9, %p42_p1  ;;  %s168_s9 = sshll.u32 %s727_s8, 4  ;;  %s169_s9 = int_to_ptr.vmem [resolvable:$true] %s168_s9 }
  0x11   : > { %s28_s11 = sadd.s32 1, %s718_s17  ;;  %s25_s12 = ssub.s32 %s722_s18, %s817_s10 }
  0x12   : > { %505 = dma.hbm_to_vmem [thread:$0]  (!%p503_p10), %s153_s25, 256, %s155_s28, [#allocation6], %s725_s6, %s725_s6, %s726_s7  }
  0x13   : > { %508 = dma.hbm_to_vmem [thread:$0]  (!%p503_p10), %s167_s5, 256, %s169_s9, [#allocation6], %s725_s6, %s725_s6, %s726_s7  }
  0x14   : > { %p35_p12 = scmp.ne.s32.totalorder %s718_s17, %s714_s16  ;;  %p26_p13 = scmp.eq.s32.totalorder %s25_s12, 0 }
  0x15   : > { %p36_p0 = scmp.eq.s32.totalorder %s722_s18, 0  ;;  %p519_p5 = scmp.lt.s32.totalorder %s722_s18, 2 }
  0x16   : > { %p827_p3 = por %p128_p2, %p35_p12  ;;  %s185_s20 = sand.u32 1, %s718_s17  }
  0x17   : > { %s833_s14 = scalar_select %p26_p13, %s718_s17, %s28_s11  }
  0x18   : > { %p37_p7 = por %p36_p0, %p35_p12  ;;  %s448_s23 = sshll.u32 %s185_s20, 3 }
  0x19   : > { %s483_s24 = sshll.u32 %s722_s18, 3  ;;  %s189_s29 = scalar_lea.vmem [#allocation2], %s448_s23 }
  0x1a   : > { %s194_s28 = scalar_lea.hbm %s909_s0, %s483_s24  ;;  %s197_s30 = sshll.u32 %s189_s29, 4  ;;  %s198_s30 = int_to_ptr.vmem [resolvable:$true] %s197_s30 }
  0x1b   : > { %s195_s5 = sshll.u32 %s194_s28, 4  ;;  %p840_p2 = pnand %p519_p5, %p37_p7  ;;  %s196_s5 = int_to_ptr.hbm [resolvable:$true] %s195_s5 }
  0x1c   : > { %s186_s9 = scalar_lea.sflag [#allocation3], %s185_s20  ;;  %s622_s11 = sshra.s32 %s196_s5, 4  ;;  %s623_s11 = int_to_ptr.hbm [resolvable:$true] %s622_s11 }
  0x1d   : > { %s624_s12 = scalar_lea.hbm %s623_s11, 8  ;;  %p626_p10 = pneg %p840_p2 }
  0x1e   : > { %p625_p9 = scmp.ne.s32.totalorder %s623_s11, %s624_s12  ;;  %s629_s25 = scalar_lea.hbm %s909_s0, 16 }
  0x1f   : > { %p630_p0 = scmp.lt.s32.totalorder %s623_s11, %s909_s0  ;;  %p631_p5 = scmp.lt.s32.totalorder %s629_s25, %s624_s12 }
  0x20   : > { %p627_p12 = pnand %p626_p10, %p625_p9 }
  0x21   : > { %p632_p7 = por %p631_p5, %p630_p0 }
  0x22   : > { %p628_p13 = pneg %p627_p12 }
  0x24   : > { %p633_p11 = pnand %p632_p7, %p628_p13 }
  0x26   : > { %636 = shalt.err (!%p633_p11)
}
  0x27   : > { %512 = dma.hbm_to_vmem [thread:$0]  (!%p840_p2), %s196_s5, 128, %s198_s30, %s186_s9, %s725_s6, %s725_s6, %s726_s7  }
  0x28   : > { %209 = sbr.rel (%p798_p8) target bundleno = 332 (0x14c), region = 36  ;;  %s860_s20 = sand.u32 (!%p798_p8), 1, %s714_s16  }
  0x29   : > { %s452_s29 = sshll.u32 (!%p798_p8), %s860_s20, 3  ;;  %s212_s11 = scalar_lea.sflag (!%p798_p8), [#allocation3], %s860_s20 }
  0x2a   : > { %s215_s12 = scalar_lea.vmem (!%p798_p8), [#allocation2], %s452_s29 }
  0x2d   : > { %697 = dma.done.wait (%p785_p4), %s212_s11, 128  }
  0x2e   : > { %699 = vsyncadd (%p785_p4), %s212_s11, 4294967168 }
  0x2f   : > { %701 = dma.done.wait (%p42_p1), [#allocation6], 512  }
  0x30   : > { %703 = vsyncadd (%p42_p1), [#allocation6], 4294966784  ;;  %v486_v0 = vld [vmem:[#allocation5 + $0x8] sm:$0xff]  ;;  %v485_v1 = vld [vmem:[#allocation5] sm:$0xff]  ;;  %vm277_vm0 = vcmask 261120   ;;  %s455_s21 = sshll.u32 %s860_s20, 4 }
  0x31   : > { %287 = vmatpush.bf16.msra.mxu0 %v486_v0  ;;  %v484_v2 = vld [vmem:[%s215_s12] sm:$0xff]  ;;  %s489_s7 = sshll.u32 %s776_s19, 4  ;;  %s250_s9 = scalar_lea.vmem [#allocation8], %s455_s21 }
  0x32   : > { %v488_v3 = vld [vmem:[#allocation7 + $0x8] sm:$0xff]  ;;  %v487_v4 = vld [vmem:[#allocation7] sm:$0xff]  ;;  %s347_s8 = scalar_lea.hbm %s913_s4, %s489_s7  ;;  %s348_s24 = sshll.u32 %s250_s9, 4  ;;  %s349_s24 = int_to_ptr.vmem [resolvable:$true] %s348_s24 }
  0x33   : > { %325 = vmatpush.bf16.msra.mxu1 %v488_v3  ;;  %v561_v8 = vld [vmem:[%s912_s3] ss:$0 sm:$0xff]  ;;  %s350_s23 = sshll.u32 %s347_s8, 4  ;;  %s336_s25 = scalar_lea.sflag [#allocation4], %s860_s20  ;;  %s351_s23 = int_to_ptr.hbm [resolvable:$true] %s350_s23 }
  0x34   : > { %s666_s27 = sshra.s32 %s351_s23, 4  ;;  %s672_s11 = scalar_lea.hbm %s913_s4, 32  ;;  %s667_s27 = int_to_ptr.hbm [resolvable:$true] %s666_s27 }
  0x35   : > { %288 = vmatpush.bf16.msra.mxu0 %v485_v1  ;;  %s668_s19 = scalar_lea.hbm %s667_s27, 16  ;;  %p673_p11 = scmp.lt.s32.totalorder %s667_s27, %s913_s4 }
  0x36   : > { %p669_p1 = scmp.ne.s32.totalorder %s667_s27, %s668_s19  ;;  %p674_p2 = scmp.lt.s32.totalorder %s672_s11, %s668_s19 }
  0x37   : > { %326 = vmatpush.bf16.msra.mxu1 %v487_v4 }
  0x38   : > { %468 = vmatmul.msk.bf16.vlgmr.msra.gmra.mxu0 %vm277_vm0, %v484_v2  ;;  %p670_p4 = pnand %p669_p1, %p827_p3  ;;  %p675_p9 = por %p674_p2, %p673_p11 }
  0x3a   : > { %p671_p8 = pneg %p670_p4 }
  0x3c   : > { %p676_p10 = pnand %p675_p9, %p671_p8 }
  0xb5   : > { %v290_v5 = vpop.f32.mrf.mxu0 }
  0xbd   : > { %v292_v6 = vpop.f32.mrf.mxu0 }
  0xbe   : > { %v295_v7 = vpack.c.bf16 %v292_v6, %v290_v5 }
  0xc0   : > { %477 = vmatmul.msk.bf16.vlgmr.msra.gmra.mxu1 %vm277_vm0, %v295_v7 }
 0x13d   : > { %v328_v9 = vpop.f32.mrf.mxu1 }
 0x13e   : > { %v329_v10 = vadd.f32 %v561_v8, %v328_v9 }
 0x140   : > { %333 = vst [vmem:[%s250_s9] sm:$0xff] %v329_v10 }
 0x145   : > { %v330_v11 = vpop.f32.mrf.mxu1 }
 0x146   : > { %v331_v12 = vadd.f32 %v561_v8, %v330_v11 }
 0x148   : > { %334 = vst [vmem:[%s250_s9 + $0x8] sm:$0xff] %v331_v12 }
 0x149   : > { %679 = shalt.err (!%p676_p10)
}
 0x14a   : > { %s728_s20 = smov 128   ;;  %s729_s26 = smov 8  }
 0x14b   : > { %500 = dma.vmem_to_hbm [thread:$0]  (%p827_p3), %s349_s24, 256, %s351_s23, %s336_s25, %s728_s20, %s728_s20, %s729_s26  }
 0x14c PF: > { %s365_s6 = sand.u32 1, %s710_s15   ;;  %p919_p12 = scmp.ge.s32.totalorder %s722_s18, 2 }
 0x14d   : > { %s366_s7 = scalar_lea.sflag [#allocation4], %s365_s6 }
 0x14e   : > { %p514_p13 = pnand %p919_p12, %p790_p6 }
 0x150   : > { %p515_p0 = pneg %p514_p13 }
 0x152   : > { %705 = dma.done.wait (%p515_p0), %s366_s7, 256  }
 0x153   : > { %707 = vsyncadd (%p515_p0), %s366_s7, 4294967040  ;;  %p18_p5 = scmp.ge.s32.totalorder %s817_s10, 4   ;;  %s920_s15 = smov %s714_s16 }
 0x154   : > { %s921_s16 = smov %s718_s17  ;;  %s922_s17 = smov %s833_s14 }
 0x155   : > { %s923_s18 = smov %s817_s10  ;;  %20 = sbr.rel (!%p18_p5) target bundleno = 6 (0x6), region = 89 }
 0x15a   :  { %372 = vsyncpa [#allocation3], 1 }
 0x15b   :  { %374 = vsyncpa [#allocation3 + $0x1], 1 }
 0x15c   :  { %375 = vsyncpa [#allocation6], 1 }
 0x15d   :  { %376 = vsyncpa [#allocation4], 1 }
 0x15e   :  { %378 = vsyncpa [#allocation4 + $0x1], 1 }

</bundles_post_ra>
